<compile_context>
chip_gen: v7x
topology: tpu7x:2x2x1
jax: 0.10.0
libtpu: 0.0.40
codegen_flags: <defaults>
</compile_context>

<pallas_src>
import jax
import jax.numpy as jnp
from jax.experimental import pallas as pl
from jax.experimental.pallas import tpu as pltpu

EPS = 1e-5
NEG_SLOPE = 0.01


def _bn_lrelu(h, gamma, beta):
    # BatchNorm1d (training mode): stats over batch axis, biased variance.
    # Single-pass variance + folded affine keeps the VPU chain short; rsqrt
    # lowers to the EUP slot (effectively free next to the matmuls).
    mean = jnp.mean(h, axis=0, keepdims=True)
    mean_sq = jnp.mean(h * h, axis=0, keepdims=True)
    var = mean_sq - mean * mean
    scale = gamma * jax.lax.rsqrt(var + EPS)
    shift = beta - mean * scale
    hn = h * scale + shift
    # LeakyReLU(negative_slope=0.01) as a max: 2 VALU ops.
    return jnp.maximum(hn, NEG_SLOPE * hn)


def critic_kernel(s_ref, a_ref,
                  w1s_ref, w1a_ref, w2_ref, w3_ref, w4_ref,
                  b4_ref, bn_ref,
                  out_ref):
    bn = bn_ref[...]  # (6, H): rows = [g1, be1, g2, be2, g3, be3]

    # fc1 on the concatenated [state, action] input, expressed as a split
    # matmul so the concat never materializes.  Linear biases b1/b2/b3 are
    # omitted on purpose: training-mode BN right after each Linear cancels any
    # per-feature additive constant exactly.
    h = (jnp.dot(s_ref[...], w1s_ref[...], preferred_element_type=jnp.float32)
         + jnp.dot(a_ref[...], w1a_ref[...], preferred_element_type=jnp.float32))
    h = _bn_lrelu(h, bn[0:1, :], bn[1:2, :])

    h = jnp.dot(h, w2_ref[...], preferred_element_type=jnp.float32)
    h = _bn_lrelu(h, bn[2:3, :], bn[3:4, :])

    h = jnp.dot(h, w3_ref[...], preferred_element_type=jnp.float32)
    h = _bn_lrelu(h, bn[4:5, :], bn[5:6, :])

    out = jnp.dot(h, w4_ref[...], preferred_element_type=jnp.float32) + b4_ref[...]
    out_ref[...] = out.astype(out_ref.dtype)


def critic_forward(state, action, params):
    """state: [B, state_size], action: [B, action_size] -> [B, 1]"""
    state = state.astype(jnp.float32)
    action = action.astype(jnp.float32)
    B = state.shape[0]

    args = (state, action,
            params["w1s"], params["w1a"],
            params["w2"], params["w3"], params["w4"],
            params["b4"], params["bn"])

    vmem_spec = pl.BlockSpec(memory_space=pltpu.VMEM)
    return pl.pallas_call(
        critic_kernel,
        out_shape=jax.ShapeDtypeStruct((B, 1), jnp.float32),
        in_specs=[vmem_spec] * len(args),
        out_specs=vmem_spec,
        # Explicit VMEM budget so the whole-batch-resident design stays safe on
        # v7x (64 MiB physical / 32 MiB default scoped) as well as v5e/v6e.
        compiler_params=pltpu.CompilerParams(vmem_limit_bytes=32 * 1024 * 1024),
    )(*args)


def init_params(key, state_size, action_size, hidden_size):
    """Deterministic synthetic init (shapes match the PyTorch module)."""
    d_in = state_size + action_size
    ks = jax.random.split(key, 8)

    def lin(kw, kb, fan_in, fan_out):
        # kaiming-uniform-ish, deterministic; stored as [in, out] (transposed vs torch)
        bound = 1.0 / jnp.sqrt(fan_in)
        w = jax.random.uniform(kw, (fan_in, fan_out), jnp.float32, -bound, bound)
        b = jax.random.uniform(kb, (1, fan_out), jnp.float32, -bound, bound)
        return w, b

    w1, b1 = lin(ks[0], ks[1], d_in, hidden_size)
    w2, b2 = lin(ks[2], ks[3], hidden_size, hidden_size)
    w3, b3 = lin(ks[4], ks[5], hidden_size, hidden_size)
    w4, b4 = lin(ks[6], ks[7], hidden_size, 1)

    ones = jnp.ones((1, hidden_size), jnp.float32)
    zeros = jnp.zeros((1, hidden_size), jnp.float32)

    # Pre-split fc1 weight once (state rows / action rows) so the kernel can do
    # a split matmul and skip the input concat entirely.
    w1s, w1a = w1[:state_size], w1[state_size:]

    # Pack all BN affine params into one (6, H) slab -> single input / DMA.
    bn = jnp.concatenate([ones, zeros, ones, zeros, ones, zeros], axis=0)

    return dict(w1=w1, w1s=w1s, w1a=w1a, b1=b1, g1=ones, be1=zeros,
                w2=w2, b2=b2, g2=ones, be2=zeros,
                w3=w3, b3=b3, g3=ones, be3=zeros,
                w4=w4, b4=b4, bn=bn)


def critic_reference(state, action, p):
    """Pure-JAX reference mirroring the PyTorch forward (training-mode BN)."""
    x = jnp.concatenate([state, action], axis=1).astype(jnp.float32)

    def bn_lrelu(h, g, be):
        mean = jnp.mean(h, axis=0, keepdims=True)
        var = jnp.mean((h - mean) ** 2, axis=0, keepdims=True)
        hn = (h - mean) / jnp.sqrt(var + EPS) * g + be
        return jnp.where(hn >= 0, hn, NEG_SLOPE * hn)

    h = bn_lrelu(x @ p["w1"] + p["b1"], p["g1"], p["be1"])
    h = bn_lrelu(h @ p["w2"] + p["b2"], p["g2"], p["be2"])
    h = bn_lrelu(h @ p["w3"] + p["b3"], p["g3"], p["be3"])
    return h @ p["w4"] + p["b4"]


if __name__ == "__main__":
    state_size, action_size, hidden_size = 8, 8, 32
    batch = 8  # BatchNorm1d training mode needs batch > 1; multiple of 8 sublanes

    key = jax.random.PRNGKey(0)
    k_s, k_a, k_p = jax.random.split(key, 3)
    state = jax.random.normal(k_s, (batch, state_size), jnp.float32)
    action = jax.random.normal(k_a, (batch, action_size), jnp.float32)
    params = init_params(k_p, state_size, action_size, hidden_size)

    out = critic_forward(state, action, params)
    out = jax.block_until_ready(out)

    ref = critic_reference(state, action, params)
    assert out.shape == (batch, 1)
    assert jnp.allclose(out, ref, atol=1e-4, rtol=1e-4), (out, ref)

    print("KERNEL_OK")
</pallas_src>

<mosaic_0001>
module attributes {stable_mosaic.version = 11 : i64} {
  func.func @critic_kernel(%arg0: memref<8x8xf32, #tpu.memory_space<vmem>>, %arg1: memref<8x8xf32, #tpu.memory_space<vmem>>, %arg2: memref<8x32xf32, #tpu.memory_space<vmem>>, %arg3: memref<8x32xf32, #tpu.memory_space<vmem>>, %arg4: memref<32x32xf32, #tpu.memory_space<vmem>>, %arg5: memref<32x32xf32, #tpu.memory_space<vmem>>, %arg6: memref<32x1xf32, #tpu.memory_space<vmem>>, %arg7: memref<1x1xf32, #tpu.memory_space<vmem>>, %arg8: memref<6x32xf32, #tpu.memory_space<vmem>>, %arg9: memref<8x1xf32, #tpu.memory_space<vmem>>) attributes {dimension_semantics = [], scalar_prefetch = 0 : i64, scratch_operands = 0 : i64, tpu.core_type = #tpu.core_type<tc>} {
    %c0 = arith.constant 0 : index
    %c0_0 = arith.constant 0 : index
    %0 = vector.load %arg8[%c0, %c0_0] : memref<6x32xf32, #tpu.memory_space<vmem>>, vector<6x32xf32>
    %c0_1 = arith.constant 0 : index
    %c0_2 = arith.constant 0 : index
    %1 = vector.load %arg0[%c0_1, %c0_2] : memref<8x8xf32, #tpu.memory_space<vmem>>, vector<8x8xf32>
    %c0_3 = arith.constant 0 : index
    %c0_4 = arith.constant 0 : index
    %2 = vector.load %arg2[%c0_3, %c0_4] : memref<8x32xf32, #tpu.memory_space<vmem>>, vector<8x32xf32>
    %cst = arith.constant dense<0.000000e+00> : vector<8x32xf32>
    %3 = tpu.matmul %1, %2, %cst {dimension_numbers = #tpu.dot_dimension_numbers<[1], [0], [0], [1], [0, 0, 1, 1], [], []>} : vector<8x8xf32>, vector<8x32xf32>, vector<8x32xf32> -> vector<8x32xf32>
    %c0_5 = arith.constant 0 : index
    %c0_6 = arith.constant 0 : index
    %4 = vector.load %arg1[%c0_5, %c0_6] : memref<8x8xf32, #tpu.memory_space<vmem>>, vector<8x8xf32>
    %c0_7 = arith.constant 0 : index
    %c0_8 = arith.constant 0 : index
    %5 = vector.load %arg3[%c0_7, %c0_8] : memref<8x32xf32, #tpu.memory_space<vmem>>, vector<8x32xf32>
    %cst_9 = arith.constant dense<0.000000e+00> : vector<8x32xf32>
    %6 = tpu.matmul %4, %5, %cst_9 {dimension_numbers = #tpu.dot_dimension_numbers<[1], [0], [0], [1], [0, 0, 1, 1], [], []>} : vector<8x8xf32>, vector<8x32xf32>, vector<8x32xf32> -> vector<8x32xf32>
    %7 = arith.addf %3, %6 : vector<8x32xf32>
    %8 = vector.extract_strided_slice %0 {offsets = [0, 0], sizes = [1, 32], strides = [1, 1]} : vector<6x32xf32> to vector<1x32xf32>
    %9 = vector.extract_strided_slice %0 {offsets = [1, 0], sizes = [1, 32], strides = [1, 1]} : vector<6x32xf32> to vector<1x32xf32>
    %cst_10 = arith.constant dense<0.000000e+00> : vector<32xf32>
    %10 = vector.multi_reduction <add>, %7, %cst_10 [0] : vector<8x32xf32> to vector<32xf32>
    %11 = vector.shape_cast %10 : vector<32xf32> to vector<1x32xf32>
    %cst_11 = arith.constant 8.000000e+00 : f32
    %12 = vector.broadcast %cst_11 : f32 to vector<1x32xf32>
    %13 = arith.divf %11, %12 : vector<1x32xf32>
    %14 = arith.mulf %7, %7 : vector<8x32xf32>
    %cst_12 = arith.constant dense<0.000000e+00> : vector<32xf32>
    %15 = vector.multi_reduction <add>, %14, %cst_12 [0] : vector<8x32xf32> to vector<32xf32>
    %16 = vector.shape_cast %15 : vector<32xf32> to vector<1x32xf32>
    %cst_13 = arith.constant 8.000000e+00 : f32
    %17 = vector.broadcast %cst_13 : f32 to vector<1x32xf32>
    %18 = arith.divf %16, %17 : vector<1x32xf32>
    %19 = arith.mulf %13, %13 : vector<1x32xf32>
    %20 = arith.subf %18, %19 : vector<1x32xf32>
    %cst_14 = arith.constant 9.99999974E-6 : f32
    %21 = vector.broadcast %cst_14 : f32 to vector<1x32xf32>
    %22 = arith.addf %20, %21 : vector<1x32xf32>
    %23 = math.rsqrt %22 : vector<1x32xf32>
    %24 = arith.mulf %8, %23 : vector<1x32xf32>
    %25 = arith.mulf %13, %24 : vector<1x32xf32>
    %26 = arith.subf %9, %25 : vector<1x32xf32>
    %27 = vector.broadcast %24 : vector<1x32xf32> to vector<8x32xf32>
    %28 = arith.mulf %7, %27 : vector<8x32xf32>
    %29 = vector.broadcast %26 : vector<1x32xf32> to vector<8x32xf32>
    %30 = arith.addf %28, %29 : vector<8x32xf32>
    %cst_15 = arith.constant 0.00999999977 : f32
    %31 = vector.broadcast %cst_15 : f32 to vector<8x32xf32>
    %32 = arith.mulf %31, %30 : vector<8x32xf32>
    %33 = arith.maximumf %30, %32 : vector<8x32xf32>
    %c0_16 = arith.constant 0 : index
    %c0_17 = arith.constant 0 : index
    %34 = vector.load %arg4[%c0_16, %c0_17] : memref<32x32xf32, #tpu.memory_space<vmem>>, vector<32x32xf32>
    %cst_18 = arith.constant dense<0.000000e+00> : vector<8x32xf32>
    %35 = tpu.matmul %33, %34, %cst_18 {dimension_numbers = #tpu.dot_dimension_numbers<[1], [0], [0], [1], [0, 0, 1, 1], [], []>} : vector<8x32xf32>, vector<32x32xf32>, vector<8x32xf32> -> vector<8x32xf32>
    %36 = vector.extract_strided_slice %0 {offsets = [2, 0], sizes = [1, 32], strides = [1, 1]} : vector<6x32xf32> to vector<1x32xf32>
    %37 = vector.extract_strided_slice %0 {offsets = [3, 0], sizes = [1, 32], strides = [1, 1]} : vector<6x32xf32> to vector<1x32xf32>
    %cst_19 = arith.constant dense<0.000000e+00> : vector<32xf32>
    %38 = vector.multi_reduction <add>, %35, %cst_19 [0] : vector<8x32xf32> to vector<32xf32>
    %39 = vector.shape_cast %38 : vector<32xf32> to vector<1x32xf32>
    %cst_20 = arith.constant 8.000000e+00 : f32
    %40 = vector.broadcast %cst_20 : f32 to vector<1x32xf32>
    %41 = arith.divf %39, %40 : vector<1x32xf32>
    %42 = arith.mulf %35, %35 : vector<8x32xf32>
    %cst_21 = arith.constant dense<0.000000e+00> : vector<32xf32>
    %43 = vector.multi_reduction <add>, %42, %cst_21 [0] : vector<8x32xf32> to vector<32xf32>
    %44 = vector.shape_cast %43 : vector<32xf32> to vector<1x32xf32>
    %cst_22 = arith.constant 8.000000e+00 : f32
    %45 = vector.broadcast %cst_22 : f32 to vector<1x32xf32>
    %46 = arith.divf %44, %45 : vector<1x32xf32>
    %47 = arith.mulf %41, %41 : vector<1x32xf32>
    %48 = arith.subf %46, %47 : vector<1x32xf32>
    %cst_23 = arith.constant 9.99999974E-6 : f32
    %49 = vector.broadcast %cst_23 : f32 to vector<1x32xf32>
    %50 = arith.addf %48, %49 : vector<1x32xf32>
    %51 = math.rsqrt %50 : vector<1x32xf32>
    %52 = arith.mulf %36, %51 : vector<1x32xf32>
    %53 = arith.mulf %41, %52 : vector<1x32xf32>
    %54 = arith.subf %37, %53 : vector<1x32xf32>
    %55 = vector.broadcast %52 : vector<1x32xf32> to vector<8x32xf32>
    %56 = arith.mulf %35, %55 : vector<8x32xf32>
    %57 = vector.broadcast %54 : vector<1x32xf32> to vector<8x32xf32>
    %58 = arith.addf %56, %57 : vector<8x32xf32>
    %cst_24 = arith.constant 0.00999999977 : f32
    %59 = vector.broadcast %cst_24 : f32 to vector<8x32xf32>
    %60 = arith.mulf %59, %58 : vector<8x32xf32>
    %61 = arith.maximumf %58, %60 : vector<8x32xf32>
    %c0_25 = arith.constant 0 : index
    %c0_26 = arith.constant 0 : index
    %62 = vector.load %arg5[%c0_25, %c0_26] : memref<32x32xf32, #tpu.memory_space<vmem>>, vector<32x32xf32>
    %cst_27 = arith.constant dense<0.000000e+00> : vector<8x32xf32>
    %63 = tpu.matmul %61, %62, %cst_27 {dimension_numbers = #tpu.dot_dimension_numbers<[1], [0], [0], [1], [0, 0, 1, 1], [], []>} : vector<8x32xf32>, vector<32x32xf32>, vector<8x32xf32> -> vector<8x32xf32>
    %64 = vector.extract_strided_slice %0 {offsets = [4, 0], sizes = [1, 32], strides = [1, 1]} : vector<6x32xf32> to vector<1x32xf32>
    %65 = vector.extract_strided_slice %0 {offsets = [5, 0], sizes = [1, 32], strides = [1, 1]} : vector<6x32xf32> to vector<1x32xf32>
    %cst_28 = arith.constant dense<0.000000e+00> : vector<32xf32>
    %66 = vector.multi_reduction <add>, %63, %cst_28 [0] : vector<8x32xf32> to vector<32xf32>
    %67 = vector.shape_cast %66 : vector<32xf32> to vector<1x32xf32>
    %cst_29 = arith.constant 8.000000e+00 : f32
    %68 = vector.broadcast %cst_29 : f32 to vector<1x32xf32>
    %69 = arith.divf %67, %68 : vector<1x32xf32>
    %70 = arith.mulf %63, %63 : vector<8x32xf32>
    %cst_30 = arith.constant dense<0.000000e+00> : vector<32xf32>
    %71 = vector.multi_reduction <add>, %70, %cst_30 [0] : vector<8x32xf32> to vector<32xf32>
    %72 = vector.shape_cast %71 : vector<32xf32> to vector<1x32xf32>
    %cst_31 = arith.constant 8.000000e+00 : f32
    %73 = vector.broadcast %cst_31 : f32 to vector<1x32xf32>
    %74 = arith.divf %72, %73 : vector<1x32xf32>
    %75 = arith.mulf %69, %69 : vector<1x32xf32>
    %76 = arith.subf %74, %75 : vector<1x32xf32>
    %cst_32 = arith.constant 9.99999974E-6 : f32
    %77 = vector.broadcast %cst_32 : f32 to vector<1x32xf32>
    %78 = arith.addf %76, %77 : vector<1x32xf32>
    %79 = math.rsqrt %78 : vector<1x32xf32>
    %80 = arith.mulf %64, %79 : vector<1x32xf32>
    %81 = arith.mulf %69, %80 : vector<1x32xf32>
    %82 = arith.subf %65, %81 : vector<1x32xf32>
    %83 = vector.broadcast %80 : vector<1x32xf32> to vector<8x32xf32>
    %84 = arith.mulf %63, %83 : vector<8x32xf32>
    %85 = vector.broadcast %82 : vector<1x32xf32> to vector<8x32xf32>
    %86 = arith.addf %84, %85 : vector<8x32xf32>
    %cst_33 = arith.constant 0.00999999977 : f32
    %87 = vector.broadcast %cst_33 : f32 to vector<8x32xf32>
    %88 = arith.mulf %87, %86 : vector<8x32xf32>
    %89 = arith.maximumf %86, %88 : vector<8x32xf32>
    %c0_34 = arith.constant 0 : index
    %c0_35 = arith.constant 0 : index
    %90 = vector.load %arg6[%c0_34, %c0_35] : memref<32x1xf32, #tpu.memory_space<vmem>>, vector<32x1xf32>
    %cst_36 = arith.constant dense<0.000000e+00> : vector<8x1xf32>
    %91 = tpu.matmul %89, %90, %cst_36 {dimension_numbers = #tpu.dot_dimension_numbers<[1], [0], [0], [1], [0, 0, 1, 1], [], []>} : vector<8x32xf32>, vector<32x1xf32>, vector<8x1xf32> -> vector<8x1xf32>
    %c0_37 = arith.constant 0 : index
    %c0_38 = arith.constant 0 : index
    %92 = vector.load %arg7[%c0_37, %c0_38] : memref<1x1xf32, #tpu.memory_space<vmem>>, vector<1x1xf32>
    %93 = vector.broadcast %92 : vector<1x1xf32> to vector<8x1xf32>
    %94 = arith.addf %91, %93 : vector<8x1xf32>
    %c0_39 = arith.constant 0 : index
    %c0_40 = arith.constant 0 : index
    %95 = vector.load %arg9[%c0_39, %c0_40] : memref<8x1xf32, #tpu.memory_space<vmem>>, vector<8x1xf32>
    tpu.vector_store %arg9[%c0_39, %c0_40], %94 {strides = array<i32>} : memref<8x1xf32, #tpu.memory_space<vmem>>, vector<8x1xf32>,
    return
  }
}

</mosaic_0001>

<bundles_post_ra>
// kernel: tpu_custom_call.1
= control target key start
LH: loop header
LB: loop body
LE: loop exit
PB: predicated region body
PF: predicated region fallthrough
CT: control target
= control target key end

     0   :  { %s936_s0 = inlined_call_operand.vmem [shape: f32[8,8], index: 0, kind: input, shape index: {}]   ;;  %s937_s1 = inlined_call_operand.vmem [shape: f32[8,8], index: 1, kind: input, shape index: {}]   ;;  %s938_s2 = inlined_call_operand.hbm [shape: f32[8,32], index: 2, kind: input, shape index: {}]   ;;  %s939_s3 = inlined_call_operand.hbm [shape: f32[8,32], index: 3, kind: input, shape index: {}]   ;;  %s940_s4 = inlined_call_operand.vmem [shape: f32[32,32], index: 4, kind: input, shape index: {}]   ;;  %s941_s5 = inlined_call_operand.hbm [shape: f32[32,32], index: 5, kind: input, shape index: {}]   ;;  %s942_s6 = inlined_call_operand.vmem [shape: f32[32,1], index: 6, kind: input, shape index: {}]   ;;  %s943_s7 = inlined_call_operand.<no memory space> [shape: f32[1,1], index: 7, kind: input, shape index: {}]   ;;  %s944_s8 = inlined_call_operand.vmem [shape: f32[6,32], index: 8, kind: input, shape index: {}]   ;;  %s945_s9 = inlined_call_operand.vmem [shape: f32[8,1], index: 9, kind: output, shape index: {}]  }
   0x1   :  { %v14_v0 = vstv %s943_s7 }
   0x2   :  { %15 = vst [vmem:[#allocation2] sm:$0x1] %v14_v0 }
   0x3   :  { %16 = vsyncpa [#allocation4], 0 }
   0x4   :  { %17 = vsyncpa [#allocation6], 0  ;;  %s760_s11 = smov [#allocation5]   ;;  %s761_s13 = smov [#allocation3]  }
   0x5   :  { %s38_s12 = sshll.u32 %s760_s11, 4  ;;  %s28_s14 = sshll.u32 %s761_s13, 4  ;;  %s39_s12 = int_to_ptr.vmem [resolvable:$true] %s38_s12  ;;  %s29_s14 = int_to_ptr.vmem [resolvable:$true] %s28_s14 }
   0x6   :  { %s690_s17 = scalar_lea.hbm %s939_s3, 128 }
   0x7   :  { %p691_p0 = scmp.ne.s32.totalorder %s939_s3, %s690_s17  ;;  %p694_p1 = scmp.lt.u32.totalorder %s690_s17, %s939_s3 }
   0x9   :  { %p696_p2 = pnand %p694_p1, %p691_p0 }
   0xb   :  { %699 = shalt.err (!%p696_p2)
}
   0xc   :  { %s700_s7 = scalar_lea.vmem %s39_s12, 128  ;;  %p705_p4 = scmp.lt.s32.totalorder %s39_s12, %s39_s12 }
   0xd   :  { %p701_p3 = scmp.ne.s32.totalorder %s39_s12, %s700_s7  ;;  %p706_p5 = scmp.lt.s32.totalorder %s700_s7, %s700_s7 }
   0xf   :  { %p707_p6 = por %p706_p5, %p705_p4 }
  0x11   :  { %p708_p7 = pnand %p707_p6, %p701_p3 }
  0x13   :  { %711 = shalt.err (!%p708_p7)
}
  0x14   :  { %41 = dma.hbm_to_vmem [thread:$0]  %s939_s3, 128, %s39_s12, [#allocation6]  }
  0x15   :  { %s712_s26 = scalar_lea.hbm %s938_s2, 128 }
  0x16   :  { %p713_p8 = scmp.ne.s32.totalorder %s938_s2, %s712_s26  ;;  %p716_p9 = scmp.lt.u32.totalorder %s712_s26, %s938_s2 }
  0x18   :  { %p718_p10 = pnand %p716_p9, %p713_p8 }
  0x1a   :  { %721 = shalt.err (!%p718_p10)
}
  0x1b   :  { %s722_s10 = scalar_lea.vmem %s29_s14, 128  ;;  %p727_p12 = scmp.lt.s32.totalorder %s29_s14, %s29_s14 }
  0x1c   :  { %p723_p11 = scmp.ne.s32.totalorder %s29_s14, %s722_s10  ;;  %p728_p13 = scmp.lt.s32.totalorder %s722_s10, %s722_s10 }
  0x1e   :  { %p729_p0 = por %p728_p13, %p727_p12 }
  0x20   :  { %p730_p1 = pnand %p729_p0, %p723_p11 }
  0x22   :  { %733 = shalt.err (!%p730_p1)
}
  0x23   :  { %31 = dma.hbm_to_vmem [thread:$0]  %s938_s2, 128, %s29_s14, [#allocation4]  }
  0x24   :  { %s762_s12 = smov [#allocation7]   ;;  %s734_s17 = scalar_lea.hbm %s941_s5, 512 }
  0x25   :  { %s49_s13 = sshll.u32 %s762_s12, 4  ;;  %p735_p2 = scmp.ne.s32.totalorder %s941_s5, %s734_s17  ;;  %s50_s13 = int_to_ptr.vmem [resolvable:$true] %s49_s13 }
  0x26   :  { %p738_p3 = scmp.lt.u32.totalorder %s734_s17, %s941_s5 }
  0x28   :  { %p740_p4 = pnand %p738_p3, %p735_p2 }
  0x2a   :  { %743 = shalt.err (!%p740_p4)
}
  0x2b   :  { %s744_s7 = scalar_lea.vmem %s50_s13, 512  ;;  %p749_p6 = scmp.lt.s32.totalorder %s50_s13, %s50_s13 }
  0x2c   :  { %p745_p5 = scmp.ne.s32.totalorder %s50_s13, %s744_s7  ;;  %p750_p7 = scmp.lt.s32.totalorder %s744_s7, %s744_s7 }
  0x2e   :  { %p751_p8 = por %p750_p7, %p749_p6 }
  0x30   :  { %p752_p9 = pnand %p751_p8, %p745_p5 }
  0x32   :  { %755 = shalt.err (!%p752_p9)
}
  0x33   :  { %s763_s2 = smov 128   ;;  %s764_s14 = smov 8  }
  0x34   :  { %55 = dma.hbm_to_vmem [thread:$0]  %s941_s5, 512, %s50_s13, [#allocation6], %s763_s2, %s763_s2, %s764_s14  }
  0x35   :  { %756 = dma.done.wait [#allocation4], 128  }
  0x36   :  { %757 = vsyncadd [#allocation4], 4294967168 }
  0x37   :  { %758 = dma.done.wait [#allocation6], 640  }
  0x38   :  { %759 = vsyncadd [#allocation6], 4294966656  ;;  %v765_v1 = vmov 0.0   ;;  %vm766_vm0 = vmmov 0   ;;  %vm76_vm1 = vcmask 64512   ;;  %v75_v2 = vld [vmem:[#allocation5] sm:$0xff]  ;;  %v252_v35 = vlaneseq }
  0x39   :  { %613 = vmatprep.subr.mxu0 %v765_v1  ;;  %615 = vmatprep.mubr.msk.f32.mxu0 %vm766_vm0, %v765_v1  ;;  %v74_v3 = vld [vmem:[%s937_s1] sm:$0xff]  ;;  %v265_v7 = vld [vmem:[%s940_s4 + $0x8] sm:$0xff]  ;;  %v767_v9 = vmov 0.0|0.0   ;;  %v266_v10 = vld [vmem:[%s940_s4 + $0x10] sm:$0xff]  ;;  %vm223_vm2 = vcmask 261120   ;;  %vm580_vm3 = vcmask 7168  }
  0x3a   :  { %631 = vmatprep.mubr.msk.f32.mxu1 %vm766_vm0, %v765_v1  ;;  %v73_v4 = vld [vmem:[#allocation3] sm:$0xff]  ;;  %614 = vmatpush3.msra.mxu0 %v75_v2  ;;  %v267_v11 = vld [vmem:[%s940_s4 + $0x18] sm:$0xff]  ;;  %v891_v36 = vshrl.u32 %v252_v35, 7  ;;  %v383_v55 = vld [vmem:[#allocation7 + $0x18] sm:$0xff] }
  0x3b   :  { %616 = vmatmul.mubr.msk.f32.vlgmr.msra.gmra.mrb[0].mxu0 %vm76_vm1, %v74_v3  ;;  %618 = vmatprep.subr.mxu0 %v765_v1  ;;  %v72_v5 = vld [vmem:[%s936_s0] sm:$0xff]  ;;  %v660_v12 = vpack.c.bf16 %v267_v11, %v266_v10  ;;  %v380_v51 = vld [vmem:[#allocation7] sm:$0xff] }
  0x3c   :  { %619 = vmatpush3.msra.mxu0 %v73_v4  ;;  %620 = vmatprep.mubr.msk.f32.mxu0 %vm766_vm0, %v765_v1  ;;  %v264_v6 = vld [vmem:[%s940_s4] sm:$0xff]  ;;  %v254_v40 = vsub.s32 0, %v891_v36  ;;  %v259_v44 = vsub.s32 1, %v891_v36 }
  0x3d   :  { %v657_v8 = vpack.c.bf16 %v265_v7, %v264_v6  ;;  %656 = vmatprep.subr.bf16.mxu1 %v767_v9  ;;  %662 = vmatprep.subr.bf16.mxu0 %v767_v9  ;;  %v896_v37 = vld [vmem:[%s944_s8] sm:$0x3f] }
  0x3e   :  { %v381_v52 = vld [vmem:[#allocation7 + $0x8] sm:$0xff]  ;;  %v382_v54 = vld [vmem:[#allocation7 + $0x10] sm:$0xff] }
  0x3f   :  { %658 = vmatpush3.bf16.msra.mxu1 %v657_v8  ;;  %v663_v53 = vpack.c.bf16 %v381_v52, %v380_v51  ;;  %v666_v56 = vpack.c.bf16 %v383_v55, %v382_v54 }
  0x40   :  { %659 = vmatprep.subr.bf16.mxu1 %v767_v9 }
  0x43   :  { %621 = vmatmul.mubr.msk.f32.vlgmr.msra.gmra.mrb[0].mxu0 %vm76_vm1, %v72_v5  ;;  %661 = vmatpush3.bf16.msra.mxu1 %v660_v12 }
  0x44   :  { %642 = vmatprep.mubr.msk.f32.mxu0 %vm766_vm0, %v765_v1  ;;  %668 = vmatprep.subr.bf16.mxu1 %v767_v9 }
  0x45   :  { %664 = vmatpush3.bf16.msra.mxu0 %v663_v53 }
  0x46   :  { %665 = vmatprep.subr.bf16.mxu0 %v767_v9 }
  0x49   :  { %667 = vmatpush3.bf16.msra.mxu0 %v666_v56 }
 0x116   :  { %v219_v13 = vpop.f32.mrb[0].mxu0 }
 0x117   :  { %v224_v14 = vsel %vm223_vm2, %v219_v13, 0.0  ;;  %v233_v15 = vmul.f32 %v219_v13, %v219_v13  ;;  %v622_v16 = vpop.f32.mrb[1].mxu0 }
 0x118   :  { %v225_v17 = vrot.slane %v224_v14, 4 }
 0x119   :  { %v234_v18 = vsel %vm223_vm2, %v233_v15, 0.0 }
 0x11a   :  { %v226_v19 = vadd.f32 %v225_v17, %v224_v14  ;;  %v235_v20 = vrot.slane %v234_v18, 4 }
 0x11c   :  { %v227_v21 = vrot.slane %v226_v19, 2  ;;  %v236_v22 = vadd.f32 %v235_v20, %v234_v18  ;;  %v370_v18 = vsub.s32 2, %v891_v36 }
 0x11e   :  { %v228_v23 = vadd.f32 %v227_v21, %v226_v19  ;;  %v237_v24 = vrot.slane %v236_v22, 2 }
 0x120   :  { %v229_v25 = vrot.slane %v228_v23, 1  ;;  %v238_v26 = vadd.f32 %v237_v24, %v236_v22  ;;  %v375_v22 = vsub.s32 3, %v891_v36 }
 0x122   :  { %v230_v27 = vadd.f32 %v229_v25, %v228_v23  ;;  %v239_v28 = vrot.slane %v238_v26, 1 }
 0x124   :  { %v232_v29 = vmul.f32 0.125, %v230_v27  ;;  %v240_v30 = vadd.f32 %v239_v28, %v238_v26 }
 0x126   :  { %v241_v31 = vmul.f32 0.125, %v240_v30  ;;  %v242_v32 = vmul.f32 %v232_v29, %v232_v29  ;;  %v497_v30 = vld [vmem:[%s942_s6 + $0x8] sm:$0xff] }
 0x128   :  { %v243_v33 = vsub.f32 %v241_v31, %v242_v32  ;;  %v498_v32 = vld [vmem:[%s942_s6 + $0x10] sm:$0xff] }
 0x12a   :  { %v244_v34 = vadd.f32 1e-05, %v243_v33  ;;  %v499_v33 = vld [vmem:[%s942_s6 + $0x18] sm:$0xff] }
 0x12c   :  { %684 = vrsqrt.f32 %v244_v34  ;;  %v672_v34 = vpack.c.bf16 %v499_v33, %v498_v32 }
 0x136   :  { %v685_v38 = vpop.eup %684 }
 0x137   :  { %v246_v39 = vmul.f32 %v685_v38, %v896_v37 }
 0x139   :  { %v247_v41 = vmul.f32 %v246_v39, %v232_v29  ;;  %v255_v43 = vrot.slane %v246_v39, %v254_v40  ;;  %v496_v29 = vld [vmem:[%s942_s6] sm:$0xff] }
 0x13a   :  { %v669_v31 = vpack.c.bf16 %v497_v30, %v496_v29 }
 0x13b   :  { %v249_v42 = vrot.slane %v247_v41, 7  ;;  %v256_v46 = vmul.f32 %v255_v43, %v219_v13 }
 0x13d   :  { %v251_v45 = vsub.f32 %v896_v37, %v249_v42 }
 0x13f   :  { %v260_v47 = vrot.slane %v251_v45, %v259_v44 }
 0x141   :  { %v261_v48 = vadd.f32 %v260_v47, %v256_v46 }
 0x143   :  { %v262_v49 = vmul.f32 0.01, %v261_v48 }
 0x145   :  { %v263_v50 = vmax.f32 %v261_v48, %v262_v49 }
 0x147   :  { %632 = vmatmul.mubr.msk.f32.vlgmr.msra.gmra.mrb[0].mxu1 %vm223_vm2, %v263_v50 }
 0x148   :  { %653 = vmatprep.mubr.msk.f32.mxu1 %vm766_vm0, %v765_v1  ;;  %670 = vmatpush3.bf16.msra.mxu1 %v669_v31 }
 0x149   :  { %671 = vmatprep.subr.bf16.mxu1 %v767_v9 }
 0x14c   :  { %673 = vmatpush3.bf16.msra.mxu1 %v672_v34 }
 0x21a   :  { %v337_v57 = vpop.f32.mrb[0].mxu1 }
 0x21b   :  { %v341_v58 = vsel %vm223_vm2, %v337_v57, 0.0  ;;  %v349_v59 = vmul.f32 %v337_v57, %v337_v57  ;;  %v633_v60 = vpop.f32.mrb[1].mxu1 }
 0x21c   :  { %v342_v61 = vrot.slane %v341_v58, 4  ;;  %v486_v60 = vsub.s32 4, %v891_v36 }
 0x21d   :  { %v350_v62 = vsel %vm223_vm2, %v349_v59, 0.0 }
 0x21e   :  { %v343_v63 = vadd.f32 %v342_v61, %v341_v58  ;;  %v351_v0 = vrot.slane %v350_v62, 4 }
 0x220   :  { %v344_v1 = vrot.slane %v343_v63, 2  ;;  %v352_v2 = vadd.f32 %v351_v0, %v350_v62  ;;  %v491_v0 = vsub.s32 5, %v891_v36 }
 0x222   :  { %v345_v3 = vadd.f32 %v344_v1, %v343_v63  ;;  %v353_v4 = vrot.slane %v352_v2, 2 }
 0x224   :  { %v346_v5 = vrot.slane %v345_v3, 1  ;;  %v354_v6 = vadd.f32 %v353_v4, %v352_v2 }
 0x226   :  { %v347_v7 = vadd.f32 %v346_v5, %v345_v3  ;;  %v355_v8 = vrot.slane %v354_v6, 1 }
 0x228   :  { %v348_v10 = vmul.f32 0.125, %v347_v7  ;;  %v356_v11 = vadd.f32 %v355_v8, %v354_v6  ;;  %v592_v7 = vld [vmem:[#allocation2] ss:$0 sm:$0xff] }
 0x22a   :  { %v357_v12 = vmul.f32 0.125, %v356_v11  ;;  %v358_v13 = vmul.f32 %v348_v10, %v348_v10 }
 0x22c   :  { %v359_v14 = vsub.f32 %v357_v12, %v358_v13 }
 0x22e   :  { %v360_v15 = vadd.f32 1e-05, %v359_v14 }
 0x230   :  { %686 = vrsqrt.f32 %v360_v15 }
 0x23a   :  { %v687_v16 = vpop.eup %686 }
 0x23b   :  { %v362_v17 = vmul.f32 %v687_v16, %v896_v37 }
 0x23d   :  { %v363_v19 = vmul.f32 %v362_v17, %v348_v10  ;;  %v371_v21 = vrot.slane %v362_v17, %v370_v18 }
 0x23f   :  { %v365_v20 = vrot.slane %v363_v19, 7  ;;  %v372_v24 = vmul.f32 %v371_v21, %v337_v57 }
 0x241   :  { %v367_v23 = vsub.f32 %v896_v37, %v365_v20 }
 0x243   :  { %v376_v25 = vrot.slane %v367_v23, %v375_v22 }
 0x245   :  { %v377_v26 = vadd.f32 %v376_v25, %v372_v24 }
 0x247   :  { %v378_v27 = vmul.f32 0.01, %v377_v26 }
 0x249   :  { %v379_v28 = vmax.f32 %v377_v26, %v378_v27 }
 0x24b   :  { %643 = vmatmul.mubr.msk.f32.vlgmr.msra.gmra.mrb[2].mxu0 %vm223_vm2, %v379_v28 }
 0x31e   :  { %v453_v35 = vpop.f32.mrb[2].mxu0 }
 0x31f   :  { %v457_v38 = vsel %vm223_vm2, %v453_v35, 0.0  ;;  %v465_v39 = vmul.f32 %v453_v35, %v453_v35  ;;  %v644_v40 = vpop.f32.mrb[3].mxu0 }
 0x320   :  { %v458_v41 = vrot.slane %v457_v38, 4 }
 0x321   :  { %v466_v42 = vsel %vm223_vm2, %v465_v39, 0.0 }
 0x322   :  { %v459_v43 = vadd.f32 %v458_v41, %v457_v38  ;;  %v467_v9 = vrot.slane %v466_v42, 4 }
 0x324   :  { %v460_v44 = vrot.slane %v459_v43, 2  ;;  %v468_v45 = vadd.f32 %v467_v9, %v466_v42 }
 0x326   :  { %v461_v46 = vadd.f32 %v460_v44, %v459_v43  ;;  %v469_v47 = vrot.slane %v468_v45, 2 }
 0x328   :  { %v462_v48 = vrot.slane %v461_v46, 1  ;;  %v470_v49 = vadd.f32 %v469_v47, %v468_v45 }
 0x32a   :  { %v463_v50 = vadd.f32 %v462_v48, %v461_v46  ;;  %v471_v51 = vrot.slane %v470_v49, 1 }
 0x32c   :  { %v464_v52 = vmul.f32 0.125, %v463_v50  ;;  %v472_v53 = vadd.f32 %v471_v51, %v470_v49 }
 0x32e   :  { %v473_v54 = vmul.f32 0.125, %v472_v53  ;;  %v474_v55 = vmul.f32 %v464_v52, %v464_v52 }
 0x330   :  { %v475_v56 = vsub.f32 %v473_v54, %v474_v55 }
 0x332   :  { %v476_v57 = vadd.f32 1e-05, %v475_v56 }
 0x334   :  { %688 = vrsqrt.f32 %v476_v57 }
 0x33e   :  { %v689_v58 = vpop.eup %688 }
 0x33f   :  { %v478_v59 = vmul.f32 %v689_v58, %v896_v37 }
 0x341   :  { %v479_v61 = vmul.f32 %v478_v59, %v464_v52  ;;  %v487_v63 = vrot.slane %v478_v59, %v486_v60 }
 0x343   :  { %v481_v62 = vrot.slane %v479_v61, 7  ;;  %v488_v2 = vmul.f32 %v487_v63, %v453_v35 }
 0x345   :  { %v483_v1 = vsub.f32 %v896_v37, %v481_v62 }
 0x347   :  { %v492_v3 = vrot.slane %v483_v1, %v491_v0 }
 0x349   :  { %v493_v4 = vadd.f32 %v492_v3, %v488_v2 }
 0x34b   :  { %v494_v5 = vmul.f32 0.01, %v493_v4 }
 0x34d   :  { %v495_v6 = vmax.f32 %v493_v4, %v494_v5 }
 0x34f   :  { %654 = vmatmul.mubr.msk.f32.vlgmr.msra.gmra.mrb[2].mxu1 %vm223_vm2, %v495_v6 }
 0x422   :  { %v576_v8 = vpop.f32.mrb[2].mxu1 }
 0x423   :  { %v577_v10 = vadd.f32 %v592_v7, %v576_v8  ;;  %v655_v11 = vpop.f32.mrb[3].mxu1 }
 0x425   :  { %581 = vst.msk [vmem:[%s945_s9] sm:$0xff] %vm580_vm3, %v577_v10 }
 0x426   :  { %586 = vsyncpa [#allocation4], 1 }
 0x427   :  { %587 = vsyncpa [#allocation6], 1 }

</bundles_post_ra>
